<compile_context>
chip_gen: v7x
topology: tpu7x:2x2x1
jax: 0.10.0
libtpu: 0.0.40
codegen_flags: <defaults>
</compile_context>

<pallas_src>
import functools

import jax
import jax.numpy as jnp
from jax.experimental import pallas as pl
from jax.experimental.pallas import tpu as pltpu

BN_EPS = 1e-5
LEAKY_SLOPE = 0.1

_PASS1_VMEM_BUDGET = 40 * 1024 * 1024      # conservative: fits v7x's 64 MiB/TC with headroom
_WEIGHT_RESIDENT_BYTES = 8 * 1024 * 1024   # keep whole (double-buffered) weight in VMEM below this


def _round_up(x, m):
    return (x + m - 1) // m * m


def _pass1_vmem_bytes(tm, tk, K_pad, C_pad, in_it, y_it, resident, lhs_buffers):
    lhs = lhs_buffers * tm * tk * in_it
    w = 2 * (K_pad if resident else tk) * C_pad * in_it
    y = 2 * tm * C_pad * y_it
    stats = 2 * 8 * C_pad * 4
    acc = tm * C_pad * 4
    return lhs + w + y + stats + acc


def _pick_tiles(M, K_pad, C_pad, in_it, y_it, lhs_buffers):
    """Pick (tm, tk, weight_resident) for pass 1.

    Prefer large row tiles (amortize weight/LHS DMA and the ~0.35us/step grid overhead so the
    matmul stays MXU-bound on v5e/v6e) but keep >= 2 row tiles so the "parallel" M axis can
    shard across v7x's two TensorCores, and stay inside a VMEM budget that fits v7x (64 MiB/TC).
    """
    tk_cands = [c for c in (1024, 512, 256, 128) if c <= K_pad and K_pad % c == 0] or [K_pad]
    resident = 2 * K_pad * C_pad * in_it <= _WEIGHT_RESIDENT_BYTES

    def fits(tm, tk):
        return _pass1_vmem_bytes(tm, tk, K_pad, C_pad, in_it, y_it, resident,
                                 lhs_buffers) <= _PASS1_VMEM_BUDGET

    fitting = []
    for tm in (1024, 512, 256, 128):
        for tk in tk_cands:                 # largest tk that fits for this tm
            if fits(tm, tk):
                fitting.append((tm, tk))
                break
    if not fitting:                         # extreme C_pad: minimal tiles, spill to tiled weights
        return 128, tk_cands[-1], False
    for tm, tk in fitting:                  # descending tm; first one that still splits M
        if (M + tm - 1) // tm >= 2:
            return tm, tk, resident
    tm, tk = fitting[-1]                    # tiny M: single tile regardless -> least padding
    return tm, tk, resident


def _pick_pass2_rows(M_pad, C_pad, in_it, out_it):
    for tr in (2048, 1024, 512, 256, 128):
        if M_pad % tr == 0 and 2 * tr * C_pad * (in_it + out_it) <= _PASS1_VMEM_BUDGET:
            return tr
    return 128


def _vmem_limit(est_bytes):
    # explicit scoped-VMEM limit: above the 16/32 MiB defaults, below v7x's 64 MiB physical
    return int(min(60 * 1024 * 1024, max(32 * 1024 * 1024, 2 * est_bytes)))


def _conv_stats_kernel(p_ref, w_ref, y_ref, stats_ref, acc_ref, *, tk):
    """grid = (m_tiles, k_tiles).  Accumulate the conv matmul over K in f32; on the last K step
    write the conv tile (in y dtype) and its exact per-channel sum / sum-of-squares."""
    k = pl.program_id(1)

    @pl.when(k == 0)
    def _():
        acc_ref[...] = jnp.zeros_like(acc_ref)

    if w_ref.shape[0] == tk:                # weight tiled over K: one (tk, C_pad) block per step
        w_blk = w_ref[...]
    else:                                   # whole weight resident in VMEM: slice the K chunk
        off = pl.multiple_of(k * tk, tk)
        w_blk = w_ref[pl.ds(off, tk), :]

    acc_ref[...] += jnp.dot(p_ref[...], w_blk, preferred_element_type=jnp.float32)

    @pl.when(k == pl.num_programs(1) - 1)
    def _():
        y = acc_ref[...]                                     # (tm, C_pad) f32
        y_ref[...] = y.astype(y_ref.dtype)
        s0 = jnp.sum(y, axis=0, keepdims=True)
        s1 = jnp.sum(y * y, axis=0, keepdims=True)
        stats_ref[...] = jnp.concatenate(
            [s0, s1, jnp.zeros((6, y.shape[1]), jnp.float32)], axis=0)


def _bn_act_kernel(y_ref, scale_ref, shift_ref, o_ref):
    """grid = (row_tiles,).  Folded BatchNorm (y*scale + shift) + LeakyReLU(0.1)."""
    z = y_ref[...].astype(jnp.float32) * scale_ref[...] + shift_ref[...]
    o_ref[...] = jnp.where(z > 0, z, LEAKY_SLOPE * z).astype(o_ref.dtype)


def conv_bn_leaky_nhwc(x_nhwc, weight_oihw, gamma, beta, *, stride=1, padding=0,
                       matmul_dtype=jnp.bfloat16, out_dtype=jnp.float32, lhs_buffers=2):
    """Exact ConvBN forward on an NHWC input.  Returns NHWC output (out_dtype)."""
    N, H, W, Cin = x_nhwc.shape
    Cout, _, kh, kw = weight_oihw.shape
    Hout = (H + 2 * padding - kh) // stride + 1
    Wout = (W + 2 * padding - kw) // stride + 1
    M = N * Hout * Wout
    K = kh * kw * Cin

    inter_dtype = matmul_dtype              # conv intermediate dtype (BN stats stay f32-exact)
    in_it = jnp.dtype(matmul_dtype).itemsize
    y_it = jnp.dtype(inter_dtype).itemsize
    out_it = jnp.dtype(out_dtype).itemsize

    # ---- im2col: cast to the matmul dtype FIRST so the kh*kw-inflated patches are never
    #      materialized in f32; for 1x1 convs this is just a reshape (no inflation) ----
    xc = x_nhwc.astype(matmul_dtype)
    xp = jnp.pad(xc, ((0, 0), (padding, padding), (padding, padding), (0, 0)))
    taps = [xp[:, i:i + stride * Hout:stride, j:j + stride * Wout:stride, :]
            for i in range(kh) for j in range(kw)]
    patches = jnp.stack(taps, axis=3).reshape(M, K)

    # ---- lane-dense padding + tile selection ----
    K_pad = _round_up(K, 128)
    C_pad = _round_up(Cout, 128)
    tm, tk, resident = _pick_tiles(M, K_pad, C_pad, in_it, y_it, lhs_buffers)
    M_pad = _round_up(M, tm)
    num_m = M_pad // tm
    num_k = K_pad // tk

    patches = jnp.pad(patches, ((0, M_pad - M), (0, K_pad - K)))
    w_mat = jnp.transpose(weight_oihw, (2, 3, 1, 0)).reshape(K, Cout).astype(matmul_dtype)
    w_mat = jnp.pad(w_mat, ((0, K_pad - K), (0, C_pad - Cout)))

    # ---- pass 1: tiled conv matmul + streamed per-tile BN statistics ----
    if resident:
        w_spec = pl.BlockSpec((K_pad, C_pad), lambda i, k: (0, 0))   # fetched once, sliced in-kernel
    else:
        w_spec = pl.BlockSpec((tk, C_pad), lambda i, k: (k, 0))
    if lhs_buffers != 2:
        p_spec = pl.BlockSpec((tm, tk), lambda i, k: (i, k),
                              pipeline_mode=pl.Buffered(lhs_buffers))
    else:
        p_spec = pl.BlockSpec((tm, tk), lambda i, k: (i, k))

    est1 = _pass1_vmem_bytes(tm, tk, K_pad, C_pad, in_it, y_it, resident, lhs_buffers)
    weight_hbm = K_pad * C_pad * in_it * (1 if resident else num_m)
    cost = pl.CostEstimate(
        flops=2 * M_pad * K_pad * C_pad,
        transcendentals=0,
        bytes_accessed=(M_pad * K_pad * in_it + weight_hbm
                        + M_pad * C_pad * y_it + num_m * 8 * C_pad * 4))

    y_pad, stats_flat = pl.pallas_call(
        functools.partial(_conv_stats_kernel, tk=tk),
        out_shape=(jax.ShapeDtypeStruct((M_pad, C_pad), inter_dtype),
                   jax.ShapeDtypeStruct((num_m * 8, C_pad), jnp.float32)),
        grid_spec=pltpu.PrefetchScalarGridSpec(
            num_scalar_prefetch=0,
            grid=(num_m, num_k),
            in_specs=[p_spec, w_spec],
            out_specs=(pl.BlockSpec((tm, C_pad), lambda i, k: (i, 0)),
                       pl.BlockSpec((8, C_pad), lambda i, k: (i, 0))),
            scratch_shapes=[pltpu.VMEM((tm, C_pad), jnp.float32)]),
        compiler_params=pltpu.CompilerParams(
            dimension_semantics=("parallel", "arbitrary"),
            vmem_limit_bytes=_vmem_limit(est1)),
        cost_estimate=cost,
    )(patches, w_mat)

    # ---- tiny global stats reduction + folded BN coefficients (exact sums, f32) ----
    stats = stats_flat.reshape(num_m, 8, C_pad)
    count = jnp.float32(M)                      # zero-padded rows contribute 0 to both sums
    ch_sum = jnp.sum(stats[:, 0, :], axis=0)
    ch_ssq = jnp.sum(stats[:, 1, :], axis=0)
    mean = ch_sum / count
    var = jnp.maximum(ch_ssq / count - mean * mean, 0.0)    # biased variance (train-mode BN)
    # TODO(synk): running_mean/running_var momentum updates (stateful training side effect) are
    # not reproduced; ch_sum/ch_ssq already provide the needed quantities if a caller wants them.
    gamma_p = jnp.pad(gamma.astype(jnp.float32), (0, C_pad - Cout))
    beta_p = jnp.pad(beta.astype(jnp.float32), (0, C_pad - Cout))
    scale = gamma_p * jax.lax.rsqrt(var + BN_EPS)
    shift = beta_p - mean * scale
    scale = scale.reshape(1, C_pad)
    shift = shift.reshape(1, C_pad)

    # ---- pass 2: elementwise BN-apply + LeakyReLU, large lane-dense tiles (HBM-bound) ----
    tr = _pick_pass2_rows(M_pad, C_pad, y_it, out_it)
    est2 = 2 * tr * C_pad * (y_it + out_it) + 4 * C_pad * 4
    out_pad = pl.pallas_call(
        _bn_act_kernel,
        out_shape=jax.ShapeDtypeStruct((M_pad, C_pad), out_dtype),
        grid_spec=pltpu.PrefetchScalarGridSpec(
            num_scalar_prefetch=0,
            grid=(M_pad // tr,),
            in_specs=[pl.BlockSpec((tr, C_pad), lambda i: (i, 0)),
                      pl.BlockSpec((1, C_pad), lambda i: (0, 0)),
                      pl.BlockSpec((1, C_pad), lambda i: (0, 0))],
            out_specs=pl.BlockSpec((tr, C_pad), lambda i: (i, 0))),
        compiler_params=pltpu.CompilerParams(
            dimension_semantics=("parallel",),
            vmem_limit_bytes=_vmem_limit(est2)),
    )(y_pad, scale, shift)

    if M_pad == M and C_pad == Cout:
        out = out_pad                        # no padding was added: skip the slice copy entirely
    else:
        out = out_pad[:M, :Cout]
    return out.reshape(N, Hout, Wout, Cout)


def conv_bn_leaky(x_nchw, weight_oihw, gamma, beta, *, stride=1, padding=0,
                  matmul_dtype=jnp.bfloat16, out_dtype=jnp.float32, lhs_buffers=2):
    """NCHW interface matching the PyTorch module."""
    x_nhwc = jnp.transpose(x_nchw, (0, 2, 3, 1))
    out = conv_bn_leaky_nhwc(x_nhwc, weight_oihw, gamma, beta,
                             stride=stride, padding=padding,
                             matmul_dtype=matmul_dtype, out_dtype=out_dtype,
                             lhs_buffers=lhs_buffers)
    return jnp.transpose(out, (0, 3, 1, 2))


def reference(x, w, gamma, beta, *, stride, padding):
    """Pure-JAX reference (lax conv + train-mode BN + LeakyReLU) for validation."""
    y = jax.lax.conv_general_dilated(
        x, w, window_strides=(stride, stride),
        padding=[(padding, padding), (padding, padding)],
        dimension_numbers=("NCHW", "OIHW", "NCHW"))
    mean = jnp.mean(y, axis=(0, 2, 3), keepdims=True)
    var = jnp.mean(jnp.square(y - mean), axis=(0, 2, 3), keepdims=True)
    y = (y - mean) * jax.lax.rsqrt(var + BN_EPS)
    y = y * gamma.reshape(1, -1, 1, 1) + beta.reshape(1, -1, 1, 1)
    return jnp.where(y > 0, y, LEAKY_SLOPE * y)


if __name__ == "__main__":
    # Small shapes consistent with the module: N=2, Cin=4, H=W=16, Cout=8, k=3, s=1, p=1.
    N, Cin, H, W = 2, 4, 16, 16
    Cout, kh, kw = 8, 3, 3
    stride, padding = 1, 1

    key = jax.random.PRNGKey(0)
    kx, kw_, kg, kb = jax.random.split(key, 4)

    x = jax.random.normal(kx, (N, Cin, H, W), dtype=jnp.float32)
    fan_in = Cin * kh * kw
    bound = 1.0 / (fan_in ** 0.5)
    weight = jax.random.uniform(kw_, (Cout, Cin, kh, kw), jnp.float32, -bound, bound)
    gamma = 1.0 + 0.1 * jax.random.normal(kg, (Cout,), dtype=jnp.float32)
    beta = 0.1 * jax.random.normal(kb, (Cout,), dtype=jnp.float32)

    ref = reference(x, weight, gamma, beta, stride=stride, padding=padding)

    # Default production path: bf16 MXU inputs + bf16 conv intermediate, f32 accumulation/stats.
    fwd = jax.jit(functools.partial(conv_bn_leaky, stride=stride, padding=padding))
    out = jax.block_until_ready(fwd(x, weight, gamma, beta))
    assert out.shape == (N, Cout, H, W), out.shape
    err_bf16 = float(jnp.max(jnp.abs(out - ref)))
    assert err_bf16 < 1e-1, err_bf16

    # f32 parity/debug mode: tighter check against the pure-JAX reference.
    fwd_f32 = jax.jit(functools.partial(conv_bn_leaky, stride=stride, padding=padding,
                                        matmul_dtype=jnp.float32))
    out_f32 = jax.block_until_ready(fwd_f32(x, weight, gamma, beta))
    assert out_f32.shape == (N, Cout, H, W), out_f32.shape
    err_f32 = float(jnp.max(jnp.abs(out_f32 - ref)))
    assert err_f32 < 2e-3, err_f32

    print("KERNEL_OK")
</pallas_src>

<mosaic_0001>
module attributes {stable_mosaic.version = 11 : i64} {
  func.func @_conv_stats_kernel(%arg0: i32, %arg1: i32, %arg2: memref<256x128xbf16, #tpu.memory_space<vmem>>, %arg3: memref<128x128xbf16, #tpu.memory_space<vmem>>, %arg4: memref<256x128xbf16, #tpu.memory_space<vmem>>, %arg5: memref<8x128xf32, #tpu.memory_space<vmem>>, %arg6: memref<256x128xf32, #tpu.memory_space<vmem>>) attributes {dimension_semantics = [#tpu.dimension_semantics<parallel>, #tpu.dimension_semantics<arbitrary>], iteration_bounds = array<i64: 2, 1>, scalar_prefetch = 0 : i64, scratch_operands = 1 : i64, tpu.core_type = #tpu.core_type<tc>, window_params = [{transform_indices = @transform_0, window_bounds = array<i64: 256, 128>}, {pipeline_mode = #tpu.pipeline_mode<synchronous>, transform_indices = @transform_1, window_bounds = array<i64: 128, 128>}, {transform_indices = @transform_2, window_bounds = array<i64: 256, 128>}, {transform_indices = @transform_3, window_bounds = array<i64: 8, 128>}]} {
    %c0_i32 = arith.constant 0 : i32
    %0 = arith.cmpi eq, %arg1, %c0_i32 : i32
    %1 = arith.extui %0 : i1 to i32
    %c0_i32_0 = arith.constant 0 : i32
    %2 = arith.cmpi ne, %1, %c0_i32_0 : i32
    scf.if %2 {
      %cst_10 = arith.constant 0.000000e+00 : f32
      %12 = vector.broadcast %cst_10 : f32 to vector<256x128xf32>
      %c0_11 = arith.constant 0 : index
      %c0_12 = arith.constant 0 : index
      %13 = vector.load %arg6[%c0_11, %c0_12] : memref<256x128xf32, #tpu.memory_space<vmem>>, vector<256x128xf32>
      tpu.vector_store %arg6[%c0_11, %c0_12], %12 {strides = array<i32>} : memref<256x128xf32, #tpu.memory_space<vmem>>, vector<256x128xf32>,
    } else {
    }
    %c0 = arith.constant 0 : index
    %c0_1 = arith.constant 0 : index
    %3 = vector.load %arg3[%c0, %c0_1] : memref<128x128xbf16, #tpu.memory_space<vmem>>, vector<128x128xbf16>
    %c0_2 = arith.constant 0 : index
    %c0_3 = arith.constant 0 : index
    %4 = vector.load %arg6[%c0_2, %c0_3] : memref<256x128xf32, #tpu.memory_space<vmem>>, vector<256x128xf32>
    %c0_4 = arith.constant 0 : index
    %c0_5 = arith.constant 0 : index
    %5 = vector.load %arg2[%c0_4, %c0_5] : memref<256x128xbf16, #tpu.memory_space<vmem>>, vector<256x128xbf16>
    %cst = arith.constant dense<0.000000e+00> : vector<256x128xf32>
    %6 = tpu.matmul %5, %3, %cst {dimension_numbers = #tpu.dot_dimension_numbers<[1], [0], [0], [1], [0, 0, 1, 1], [], []>} : vector<256x128xbf16>, vector<128x128xbf16>, vector<256x128xf32> -> vector<256x128xf32>
    %7 = arith.addf %4, %6 : vector<256x128xf32>
    %c0_6 = arith.constant 0 : index
    %c0_7 = arith.constant 0 : index
    %8 = vector.load %arg6[%c0_6, %c0_7] : memref<256x128xf32, #tpu.memory_space<vmem>>, vector<256x128xf32>
    tpu.vector_store %arg6[%c0_6, %c0_7], %7 {strides = array<i32>} : memref<256x128xf32, #tpu.memory_space<vmem>>, vector<256x128xf32>,
    %c0_i32_8 = arith.constant 0 : i32
    %9 = arith.cmpi eq, %arg1, %c0_i32_8 : i32
    %10 = arith.extui %9 : i1 to i32
    %c0_i32_9 = arith.constant 0 : i32
    %11 = arith.cmpi ne, %10, %c0_i32_9 : i32
    scf.if %11 {
      %c0_10 = arith.constant 0 : index
      %c0_11 = arith.constant 0 : index
      %12 = vector.load %arg6[%c0_10, %c0_11] : memref<256x128xf32, #tpu.memory_space<vmem>>, vector<256x128xf32>
      %13 = arith.truncf %12 : vector<256x128xf32> to vector<256x128xbf16>
      %c0_12 = arith.constant 0 : index
      %c0_13 = arith.constant 0 : index
      %14 = vector.load %arg4[%c0_12, %c0_13] : memref<256x128xbf16, #tpu.memory_space<vmem>>, vector<256x128xbf16>
      tpu.vector_store %arg4[%c0_12, %c0_13], %13 {strides = array<i32>} : memref<256x128xbf16, #tpu.memory_space<vmem>>, vector<256x128xbf16>,
      %cst_14 = arith.constant dense<0.000000e+00> : vector<128xf32>
      %15 = vector.multi_reduction <add>, %12, %cst_14 [0] : vector<256x128xf32> to vector<128xf32>
      %16 = vector.shape_cast %15 : vector<128xf32> to vector<1x128xf32>
      %17 = arith.mulf %12, %12 : vector<256x128xf32>
      %cst_15 = arith.constant dense<0.000000e+00> : vector<128xf32>
      %18 = vector.multi_reduction <add>, %17, %cst_15 [0] : vector<256x128xf32> to vector<128xf32>
      %19 = vector.shape_cast %18 : vector<128xf32> to vector<1x128xf32>
      %cst_16 = arith.constant 0.000000e+00 : f32
      %20 = vector.broadcast %cst_16 : f32 to vector<6x128xf32>
      %21 = tpu.concatenate %16, %19, %20 in 0 : vector<1x128xf32>, vector<1x128xf32>, vector<6x128xf32> -> vector<8x128xf32>
      %c0_17 = arith.constant 0 : index
      %c0_18 = arith.constant 0 : index
      %22 = vector.load %arg5[%c0_17, %c0_18] : memref<8x128xf32, #tpu.memory_space<vmem>>, vector<8x128xf32>
      tpu.vector_store %arg5[%c0_17, %c0_18], %21 {strides = array<i32>} : memref<8x128xf32, #tpu.memory_space<vmem>>, vector<8x128xf32>,
    } else {
    }
    return
  }
  func.func @transform_0(%arg0: i32, %arg1: i32) -> (i32, i32) {
    %c0_i32 = arith.constant 0 : i32
    return %arg0, %arg1 : i32, i32
  }
  func.func @transform_1(%arg0: i32, %arg1: i32) -> (i32, i32) {
    %c0_i32 = arith.constant 0 : i32
    %c0_i32_0 = arith.constant 0 : i32
    %c0_i32_1 = arith.constant 0 : i32
    return %c0_i32, %c0_i32_0 : i32, i32
  }
  func.func @transform_2(%arg0: i32, %arg1: i32) -> (i32, i32) {
    %c0_i32 = arith.constant 0 : i32
    %c0_i32_0 = arith.constant 0 : i32
    return %arg0, %c0_i32 : i32, i32
  }
  func.func @transform_3(%arg0: i32, %arg1: i32) -> (i32, i32) {
    %c0_i32 = arith.constant 0 : i32
    %c0_i32_0 = arith.constant 0 : i32
    return %arg0, %c0_i32 : i32, i32
  }
}

module attributes {stable_mosaic.version = 11 : i64} {
  func.func @_bn_act_kernel(%arg0: i32, %arg1: memref<512x128xbf16, #tpu.memory_space<vmem>>, %arg2: memref<1x128xf32, #tpu.memory_space<vmem>>, %arg3: memref<1x128xf32, #tpu.memory_space<vmem>>, %arg4: memref<512x128xf32, #tpu.memory_space<vmem>>) attributes {dimension_semantics = [#tpu.dimension_semantics<parallel>], iteration_bounds = array<i64: 1>, scalar_prefetch = 0 : i64, scratch_operands = 0 : i64, tpu.core_type = #tpu.core_type<tc>, window_params = [{transform_indices = @transform_0, window_bounds = array<i64: 512, 128>}, {pipeline_mode = #tpu.pipeline_mode<synchronous>, transform_indices = @transform_1, window_bounds = array<i64: 1, 128>}, {pipeline_mode = #tpu.pipeline_mode<synchronous>, transform_indices = @transform_2, window_bounds = array<i64: 1, 128>}, {transform_indices = @transform_3, window_bounds = array<i64: 512, 128>}]} {
    %c0 = arith.constant 0 : index
    %c0_0 = arith.constant 0 : index
    %0 = vector.load %arg1[%c0, %c0_0] : memref<512x128xbf16, #tpu.memory_space<vmem>>, vector<512x128xbf16>
    %1 = arith.extf %0 : vector<512x128xbf16> to vector<512x128xf32>
    %c0_1 = arith.constant 0 : index
    %c0_2 = arith.constant 0 : index
    %2 = vector.load %arg2[%c0_1, %c0_2] : memref<1x128xf32, #tpu.memory_space<vmem>>, vector<1x128xf32>
    %3 = vector.broadcast %2 : vector<1x128xf32> to vector<512x128xf32>
    %4 = arith.mulf %1, %3 : vector<512x128xf32>
    %c0_3 = arith.constant 0 : index
    %c0_4 = arith.constant 0 : index
    %5 = vector.load %arg3[%c0_3, %c0_4] : memref<1x128xf32, #tpu.memory_space<vmem>>, vector<1x128xf32>
    %6 = vector.broadcast %5 : vector<1x128xf32> to vector<512x128xf32>
    %7 = arith.addf %4, %6 : vector<512x128xf32>
    %cst = arith.constant 0.000000e+00 : f32
    %8 = vector.broadcast %cst : f32 to vector<512x128xf32>
    %9 = arith.cmpf ogt, %7, %8 : vector<512x128xf32>
    %cst_5 = arith.constant 1.000000e-01 : f32
    %10 = vector.broadcast %cst_5 : f32 to vector<512x128xf32>
    %11 = arith.mulf %10, %7 : vector<512x128xf32>
    %12 = arith.select %9, %7, %11 : vector<512x128xi1>, vector<512x128xf32>
    %c0_6 = arith.constant 0 : index
    %c0_7 = arith.constant 0 : index
    %13 = vector.load %arg4[%c0_6, %c0_7] : memref<512x128xf32, #tpu.memory_space<vmem>>, vector<512x128xf32>
    tpu.vector_store %arg4[%c0_6, %c0_7], %12 {strides = array<i32>} : memref<512x128xf32, #tpu.memory_space<vmem>>, vector<512x128xf32>,
    return
  }
  func.func @transform_0(%arg0: i32) -> (i32, i32) {
    %c0_i32 = arith.constant 0 : i32
    %c0_i32_0 = arith.constant 0 : i32
    return %arg0, %c0_i32 : i32, i32
  }
  func.func @transform_1(%arg0: i32) -> (i32, i32) {
    %c0_i32 = arith.constant 0 : i32
    %c0_i32_0 = arith.constant 0 : i32
    %c0_i32_1 = arith.constant 0 : i32
    return %c0_i32, %c0_i32_0 : i32, i32
  }
  func.func @transform_2(%arg0: i32) -> (i32, i32) {
    %c0_i32 = arith.constant 0 : i32
    %c0_i32_0 = arith.constant 0 : i32
    %c0_i32_1 = arith.constant 0 : i32
    return %c0_i32, %c0_i32_0 : i32, i32
  }
  func.func @transform_3(%arg0: i32) -> (i32, i32) {
    %c0_i32 = arith.constant 0 : i32
    %c0_i32_0 = arith.constant 0 : i32
    return %arg0, %c0_i32 : i32, i32
  }
}

</mosaic_0001>

<bundles_post_ra>
// kernel: conv_bn_leaky.3
= control target key start
LH: loop header
LB: loop body
LE: loop exit
PB: predicated region body
PF: predicated region fallthrough
CT: control target
= control target key end

     0   :  { %s1151_s0 = inlined_call_operand.vmem [shape: bf16[512,128], index: 0, kind: input, shape index: {}]   ;;  %s1152_s1 = inlined_call_operand.vmem [shape: f32[1,128], index: 1, kind: input, shape index: {}]   ;;  %s1153_s2 = inlined_call_operand.vmem [shape: f32[1,128], index: 2, kind: input, shape index: {}]   ;;  %s1154_s3 = inlined_call_operand.vmem [shape: f32[512,128], index: 3, kind: output, shape index: {}]  }
   0x1   :  { %v547_v0 = vld [vmem:[%s1151_s0] sm:$0xff]   ;;  %v674_v4 = vld [vmem:[%s1151_s0 + $0x8] sm:$0xff]   ;;  %v675_v5 = vld [vmem:[%s1151_s0 + $0x10] sm:$0xff]  }
   0x2   :  { %v731_v1 = vld [vmem:[%s1152_s1] ss:$0 sm:$0xff]  ;;  %v548_v2 = vunpack.c.l.bf16 %v547_v0  ;;  %v549_v3 = vunpack.c.h.bf16 %v547_v0  ;;  %v676_v6 = vld [vmem:[%s1151_s0 + $0x18] sm:$0xff]   ;;  %v552_v8 = vunpack.c.l.bf16 %v674_v4  ;;  %v553_v9 = vunpack.c.h.bf16 %v674_v4  ;;  %v678_v36 = vld [vmem:[%s1151_s0 + $0x28] sm:$0xff]  }
   0x3   :  { %v745_v7 = vld [vmem:[%s1153_s2] ss:$0 sm:$0xff]  ;;  %v556_v10 = vunpack.c.l.bf16 %v675_v5  ;;  %v557_v11 = vunpack.c.h.bf16 %v675_v5  ;;  %v560_v14 = vunpack.c.l.bf16 %v676_v6  ;;  %v561_v15 = vunpack.c.h.bf16 %v676_v6  ;;  %v679_v48 = vld [vmem:[%s1151_s0 + $0x30] sm:$0xff]   ;;  %v680_v55 = vld [vmem:[%s1151_s0 + $0x38] sm:$0xff]  }
   0x4   :  { %v149_v12 = vmul.f32 %v548_v2, %v731_v1  ;;  %v150_v13 = vmul.f32 %v549_v3, %v731_v1  ;;  %v151_v16 = vmul.f32 %v552_v8, %v731_v1  ;;  %v152_v17 = vmul.f32 %v553_v9, %v731_v1  ;;  %v677_v28 = vld [vmem:[%s1151_s0 + $0x20] sm:$0xff]  }
   0x5   :  { %v153_v18 = vmul.f32 %v556_v10, %v731_v1  ;;  %v154_v19 = vmul.f32 %v557_v11, %v731_v1  ;;  %v155_v22 = vmul.f32 %v560_v14, %v731_v1  ;;  %v156_v23 = vmul.f32 %v561_v15, %v731_v1  ;;  %v681_v14 = vld [vmem:[%s1151_s0 + $0x40] sm:$0xff]  }
   0x6   :  { %v220_v20 = vadd.f32 %v745_v7, %v149_v12  ;;  %v221_v21 = vadd.f32 %v745_v7, %v150_v13  ;;  %v222_v24 = vadd.f32 %v745_v7, %v151_v16  ;;  %v223_v25 = vadd.f32 %v745_v7, %v152_v17 }
   0x7   :  { %v224_v26 = vadd.f32 %v745_v7, %v153_v18  ;;  %v225_v27 = vadd.f32 %v745_v7, %v154_v19  ;;  %v226_v41 = vadd.f32 %v745_v7, %v155_v22  ;;  %v227_v42 = vadd.f32 %v745_v7, %v156_v23  ;;  %v682_v19 = vld [vmem:[%s1151_s0 + $0x48] sm:$0xff]  }
   0x8   :  { %vm284_vm0 = vcmp.gt.f32.partialorder %v220_v20, 0.0  ;;  %v348_v29 = vmul.f32 0.1, %v220_v20  ;;  %vm285_vm1 = vcmp.gt.f32.partialorder %v221_v21, 0.0  ;;  %v349_v30 = vmul.f32 0.1, %v221_v21 }
   0x9   :  { %vm286_vm2 = vcmp.gt.f32.partialorder %v222_v24, 0.0  ;;  %v350_v31 = vmul.f32 0.1, %v222_v24  ;;  %vm287_vm3 = vcmp.gt.f32.partialorder %v223_v25, 0.0  ;;  %v351_v32 = vmul.f32 0.1, %v223_v25 }
   0xa   :  { %v412_v33 = vsel %vm284_vm0, %v220_v20, %v348_v29  ;;  %v413_v34 = vsel %vm285_vm1, %v221_v21, %v349_v30  ;;  %vm288_vm4 = vcmp.gt.f32.partialorder %v224_v26, 0.0  ;;  %v352_v35 = vmul.f32 0.1, %v224_v26  ;;  %v683_v30 = vld [vmem:[%s1151_s0 + $0x50] sm:$0xff]  }
   0xb   :  { %476 = vst [vmem:[%s1154_s3] sm:$0xff] %v412_v33  ;;  %477 = vst [vmem:[%s1154_s3 + $0x8] sm:$0xff] %v413_v34  ;;  %v414_v37 = vsel %vm286_vm2, %v222_v24, %v350_v31  ;;  %v415_v38 = vsel %vm287_vm3, %v223_v25, %v351_v32  ;;  %vm289_vm5 = vcmp.gt.f32.partialorder %v225_v27, 0.0  ;;  %v353_v39 = vmul.f32 0.1, %v225_v27 }
   0xc   :  { %478 = vst [vmem:[%s1154_s3 + $0x10] sm:$0xff] %v414_v37  ;;  %479 = vst [vmem:[%s1154_s3 + $0x18] sm:$0xff] %v415_v38  ;;  %v416_v40 = vsel %vm288_vm4, %v224_v26, %v352_v35  ;;  %v564_v43 = vunpack.c.l.bf16 %v677_v28  ;;  %v565_v45 = vunpack.c.h.bf16 %v677_v28  ;;  %v568_v46 = vunpack.c.l.bf16 %v678_v36  ;;  %v684_v37 = vld [vmem:[%s1151_s0 + $0x58] sm:$0xff]  }
   0xd   :  { %480 = vst [vmem:[%s1154_s3 + $0x20] sm:$0xff] %v416_v40  ;;  %v417_v44 = vsel %vm289_vm5, %v225_v27, %v353_v39  ;;  %v569_v47 = vunpack.c.h.bf16 %v678_v36  ;;  %vm290_vm6 = vcmp.gt.f32.partialorder %v226_v41, 0.0  ;;  %v354_v49 = vmul.f32 0.1, %v226_v41 }
   0xe   :  { %481 = vst [vmem:[%s1154_s3 + $0x28] sm:$0xff] %v417_v44  ;;  %vm291_vm7 = vcmp.gt.f32.partialorder %v227_v42, 0.0  ;;  %v355_v50 = vmul.f32 0.1, %v227_v42  ;;  %v157_v51 = vmul.f32 %v564_v43, %v731_v1  ;;  %v158_v52 = vmul.f32 %v565_v45, %v731_v1 }
   0xf   :  { %v159_v53 = vmul.f32 %v568_v46, %v731_v1  ;;  %v160_v54 = vmul.f32 %v569_v47, %v731_v1  ;;  %v418_v56 = vsel %vm290_vm6, %v226_v41, %v354_v49  ;;  %v572_v58 = vunpack.c.l.bf16 %v679_v48 }
  0x10   :  { %v419_v57 = vsel %vm291_vm7, %v227_v42, %v355_v50  ;;  %v573_v59 = vunpack.c.h.bf16 %v679_v48  ;;  %482 = vst [vmem:[%s1154_s3 + $0x30] sm:$0xff] %v418_v56  ;;  %v228_v60 = vadd.f32 %v745_v7, %v157_v51  ;;  %v229_v61 = vadd.f32 %v745_v7, %v158_v52 }
  0x11   :  { %483 = vst [vmem:[%s1154_s3 + $0x38] sm:$0xff] %v419_v57  ;;  %v230_v62 = vadd.f32 %v745_v7, %v159_v53  ;;  %v231_v63 = vadd.f32 %v745_v7, %v160_v54  ;;  %v161_v0 = vmul.f32 %v572_v58, %v731_v1  ;;  %v576_v3 = vunpack.c.l.bf16 %v680_v55  ;;  %v685_v58 = vld [vmem:[%s1151_s0 + $0x60] sm:$0xff]  }
  0x12   :  { %v162_v2 = vmul.f32 %v573_v59, %v731_v1  ;;  %v577_v4 = vunpack.c.h.bf16 %v680_v55  ;;  %vm292_vm8 = vcmp.gt.f32.partialorder %v228_v60, 0.0  ;;  %v356_v5 = vmul.f32 0.1, %v228_v60 }
  0x13   :  { %vm293_vm9 = vcmp.gt.f32.partialorder %v229_v61, 0.0  ;;  %v357_v6 = vmul.f32 0.1, %v229_v61  ;;  %vm294_vm10 = vcmp.gt.f32.partialorder %v230_v62, 0.0  ;;  %v358_v8 = vmul.f32 0.1, %v230_v62 }
  0x14   :  { %vm295_vm11 = vcmp.gt.f32.partialorder %v231_v63, 0.0  ;;  %v359_v9 = vmul.f32 0.1, %v231_v63  ;;  %v420_v10 = vsel %vm292_vm8, %v228_v60, %v356_v5  ;;  %v232_v12 = vadd.f32 %v745_v7, %v161_v0 }
  0x15   :  { %v421_v11 = vsel %vm293_vm9, %v229_v61, %v357_v6  ;;  %v233_v13 = vadd.f32 %v745_v7, %v162_v2  ;;  %484 = vst [vmem:[%s1154_s3 + $0x40] sm:$0xff] %v420_v10  ;;  %v422_v15 = vsel %vm294_vm10, %v230_v62, %v358_v8  ;;  %v163_v17 = vmul.f32 %v576_v3, %v731_v1 }
  0x16   :  { %485 = vst [vmem:[%s1154_s3 + $0x48] sm:$0xff] %v421_v11  ;;  %v423_v16 = vsel %vm295_vm11, %v231_v63, %v359_v9  ;;  %v164_v18 = vmul.f32 %v577_v4, %v731_v1  ;;  %486 = vst [vmem:[%s1154_s3 + $0x50] sm:$0xff] %v422_v15  ;;  %vm296_vm12 = vcmp.gt.f32.partialorder %v232_v12, 0.0  ;;  %v360_v20 = vmul.f32 0.1, %v232_v12  ;;  %v686_v63 = vld [vmem:[%s1151_s0 + $0x68] sm:$0xff]  }
  0x17   :  { %487 = vst [vmem:[%s1154_s3 + $0x58] sm:$0xff] %v423_v16  ;;  %vm297_vm13 = vcmp.gt.f32.partialorder %v233_v13, 0.0  ;;  %v361_v21 = vmul.f32 0.1, %v233_v13  ;;  %v234_v22 = vadd.f32 %v745_v7, %v163_v17  ;;  %v580_v24 = vunpack.c.l.bf16 %v681_v14 }
  0x18   :  { %v235_v23 = vadd.f32 %v745_v7, %v164_v18  ;;  %v581_v25 = vunpack.c.h.bf16 %v681_v14  ;;  %v424_v26 = vsel %vm296_vm12, %v232_v12, %v360_v20  ;;  %v584_v28 = vunpack.c.l.bf16 %v682_v19  ;;  %v687_v12 = vld [vmem:[%s1151_s0 + $0x70] sm:$0xff]  }
  0x19   :  { %v425_v27 = vsel %vm297_vm13, %v233_v13, %v361_v21  ;;  %v585_v29 = vunpack.c.h.bf16 %v682_v19  ;;  %488 = vst [vmem:[%s1154_s3 + $0x60] sm:$0xff] %v424_v26  ;;  %vm298_vm14 = vcmp.gt.f32.partialorder %v234_v22, 0.0  ;;  %v362_v31 = vmul.f32 0.1, %v234_v22  ;;  %v688_v19 = vld [vmem:[%s1151_s0 + $0x78] sm:$0xff]  }
  0x1a   :  { %489 = vst [vmem:[%s1154_s3 + $0x68] sm:$0xff] %v425_v27  ;;  %vm299_vm15 = vcmp.gt.f32.partialorder %v235_v23, 0.0  ;;  %v363_v32 = vmul.f32 0.1, %v235_v23  ;;  %v165_v33 = vmul.f32 %v580_v24, %v731_v1  ;;  %v166_v34 = vmul.f32 %v581_v25, %v731_v1 }
  0x1b   :  { %v167_v35 = vmul.f32 %v584_v28, %v731_v1  ;;  %v168_v36 = vmul.f32 %v585_v29, %v731_v1  ;;  %v426_v38 = vsel %vm298_vm14, %v234_v22, %v362_v31  ;;  %v588_v40 = vunpack.c.l.bf16 %v683_v30 }
  0x1c   :  { %v427_v39 = vsel %vm299_vm15, %v235_v23, %v363_v32  ;;  %v589_v41 = vunpack.c.h.bf16 %v683_v30  ;;  %490 = vst [vmem:[%s1154_s3 + $0x70] sm:$0xff] %v426_v38  ;;  %v236_v42 = vadd.f32 %v745_v7, %v165_v33  ;;  %v237_v43 = vadd.f32 %v745_v7, %v166_v34 }
  0x1d   :  { %491 = vst [vmem:[%s1154_s3 + $0x78] sm:$0xff] %v427_v39  ;;  %v238_v44 = vadd.f32 %v745_v7, %v167_v35  ;;  %v239_v45 = vadd.f32 %v745_v7, %v168_v36  ;;  %v169_v46 = vmul.f32 %v588_v40, %v731_v1  ;;  %v592_v48 = vunpack.c.l.bf16 %v684_v37  ;;  %v689_v40 = vld [vmem:[%s1151_s0 + $0x80] sm:$0xff]  }
  0x1e   :  { %v170_v47 = vmul.f32 %v589_v41, %v731_v1  ;;  %v593_v49 = vunpack.c.h.bf16 %v684_v37  ;;  %vm300_vm0 = vcmp.gt.f32.partialorder %v236_v42, 0.0  ;;  %v364_v50 = vmul.f32 0.1, %v236_v42 }
  0x1f   :  { %vm301_vm1 = vcmp.gt.f32.partialorder %v237_v43, 0.0  ;;  %v365_v51 = vmul.f32 0.1, %v237_v43  ;;  %vm302_vm2 = vcmp.gt.f32.partialorder %v238_v44, 0.0  ;;  %v366_v52 = vmul.f32 0.1, %v238_v44 }
  0x20   :  { %vm303_vm3 = vcmp.gt.f32.partialorder %v239_v45, 0.0  ;;  %v367_v53 = vmul.f32 0.1, %v239_v45  ;;  %v428_v54 = vsel %vm300_vm0, %v236_v42, %v364_v50  ;;  %v240_v56 = vadd.f32 %v745_v7, %v169_v46 }
  0x21   :  { %v429_v55 = vsel %vm301_vm1, %v237_v43, %v365_v51  ;;  %v241_v57 = vadd.f32 %v745_v7, %v170_v47  ;;  %492 = vst [vmem:[%s1154_s3 + $0x80] sm:$0xff] %v428_v54  ;;  %v430_v59 = vsel %vm302_vm2, %v238_v44, %v366_v52  ;;  %v171_v61 = vmul.f32 %v592_v48, %v731_v1 }
  0x22   :  { %493 = vst [vmem:[%s1154_s3 + $0x88] sm:$0xff] %v429_v55  ;;  %v431_v60 = vsel %vm303_vm3, %v239_v45, %v367_v53  ;;  %v172_v62 = vmul.f32 %v593_v49, %v731_v1  ;;  %494 = vst [vmem:[%s1154_s3 + $0x90] sm:$0xff] %v430_v59  ;;  %vm304_vm4 = vcmp.gt.f32.partialorder %v240_v56, 0.0  ;;  %v368_v0 = vmul.f32 0.1, %v240_v56  ;;  %v690_v45 = vld [vmem:[%s1151_s0 + $0x88] sm:$0xff]  }
  0x23   :  { %495 = vst [vmem:[%s1154_s3 + $0x98] sm:$0xff] %v431_v60  ;;  %vm305_vm5 = vcmp.gt.f32.partialorder %v241_v57, 0.0  ;;  %v369_v2 = vmul.f32 0.1, %v241_v57  ;;  %v242_v3 = vadd.f32 %v745_v7, %v171_v61  ;;  %v596_v5 = vunpack.c.l.bf16 %v685_v58 }
  0x24   :  { %v243_v4 = vadd.f32 %v745_v7, %v172_v62  ;;  %v597_v6 = vunpack.c.h.bf16 %v685_v58  ;;  %v432_v8 = vsel %vm304_vm4, %v240_v56, %v368_v0  ;;  %v600_v10 = vunpack.c.l.bf16 %v686_v63  ;;  %v691_v56 = vld [vmem:[%s1151_s0 + $0x90] sm:$0xff]  }
  0x25   :  { %v433_v9 = vsel %vm305_vm5, %v241_v57, %v369_v2  ;;  %v601_v11 = vunpack.c.h.bf16 %v686_v63  ;;  %496 = vst [vmem:[%s1154_s3 + $0xa0] sm:$0xff] %v432_v8  ;;  %vm306_vm6 = vcmp.gt.f32.partialorder %v242_v3, 0.0  ;;  %v370_v13 = vmul.f32 0.1, %v242_v3  ;;  %v692_v63 = vld [vmem:[%s1151_s0 + $0x98] sm:$0xff]  }
  0x26   :  { %497 = vst [vmem:[%s1154_s3 + $0xa8] sm:$0xff] %v433_v9  ;;  %vm307_vm7 = vcmp.gt.f32.partialorder %v243_v4, 0.0  ;;  %v371_v14 = vmul.f32 0.1, %v243_v4  ;;  %v173_v15 = vmul.f32 %v596_v5, %v731_v1  ;;  %v174_v16 = vmul.f32 %v597_v6, %v731_v1 }
  0x27   :  { %v175_v17 = vmul.f32 %v600_v10, %v731_v1  ;;  %v176_v18 = vmul.f32 %v601_v11, %v731_v1  ;;  %v434_v20 = vsel %vm306_vm6, %v242_v3, %v370_v13  ;;  %v604_v22 = vunpack.c.l.bf16 %v687_v12 }
  0x28   :  { %v435_v21 = vsel %vm307_vm7, %v243_v4, %v371_v14  ;;  %v605_v23 = vunpack.c.h.bf16 %v687_v12  ;;  %498 = vst [vmem:[%s1154_s3 + $0xb0] sm:$0xff] %v434_v20  ;;  %v244_v24 = vadd.f32 %v745_v7, %v173_v15  ;;  %v245_v25 = vadd.f32 %v745_v7, %v174_v16 }
  0x29   :  { %499 = vst [vmem:[%s1154_s3 + $0xb8] sm:$0xff] %v435_v21  ;;  %v246_v26 = vadd.f32 %v745_v7, %v175_v17  ;;  %v247_v27 = vadd.f32 %v745_v7, %v176_v18  ;;  %v177_v28 = vmul.f32 %v604_v22, %v731_v1  ;;  %v608_v30 = vunpack.c.l.bf16 %v688_v19  ;;  %v693_v22 = vld [vmem:[%s1151_s0 + $0xa0] sm:$0xff]  }
  0x2a   :  { %v178_v29 = vmul.f32 %v605_v23, %v731_v1  ;;  %v609_v31 = vunpack.c.h.bf16 %v688_v19  ;;  %vm308_vm8 = vcmp.gt.f32.partialorder %v244_v24, 0.0  ;;  %v372_v32 = vmul.f32 0.1, %v244_v24 }
  0x2b   :  { %vm309_vm9 = vcmp.gt.f32.partialorder %v245_v25, 0.0  ;;  %v373_v33 = vmul.f32 0.1, %v245_v25  ;;  %vm310_vm10 = vcmp.gt.f32.partialorder %v246_v26, 0.0  ;;  %v374_v34 = vmul.f32 0.1, %v246_v26 }
  0x2c   :  { %vm311_vm11 = vcmp.gt.f32.partialorder %v247_v27, 0.0  ;;  %v375_v35 = vmul.f32 0.1, %v247_v27  ;;  %v436_v36 = vsel %vm308_vm8, %v244_v24, %v372_v32  ;;  %v248_v38 = vadd.f32 %v745_v7, %v177_v28 }
  0x2d   :  { %v437_v37 = vsel %vm309_vm9, %v245_v25, %v373_v33  ;;  %v249_v39 = vadd.f32 %v745_v7, %v178_v29  ;;  %500 = vst [vmem:[%s1154_s3 + $0xc0] sm:$0xff] %v436_v36  ;;  %v438_v41 = vsel %vm310_vm10, %v246_v26, %v374_v34  ;;  %v179_v43 = vmul.f32 %v608_v30, %v731_v1 }
  0x2e   :  { %501 = vst [vmem:[%s1154_s3 + $0xc8] sm:$0xff] %v437_v37  ;;  %v439_v42 = vsel %vm311_vm11, %v247_v27, %v375_v35  ;;  %v180_v44 = vmul.f32 %v609_v31, %v731_v1  ;;  %502 = vst [vmem:[%s1154_s3 + $0xd0] sm:$0xff] %v438_v41  ;;  %vm312_vm12 = vcmp.gt.f32.partialorder %v248_v38, 0.0  ;;  %v376_v46 = vmul.f32 0.1, %v248_v38  ;;  %v694_v27 = vld [vmem:[%s1151_s0 + $0xa8] sm:$0xff]  }
  0x2f   :  { %503 = vst [vmem:[%s1154_s3 + $0xd8] sm:$0xff] %v439_v42  ;;  %vm313_vm13 = vcmp.gt.f32.partialorder %v249_v39, 0.0  ;;  %v377_v47 = vmul.f32 0.1, %v249_v39  ;;  %v250_v48 = vadd.f32 %v745_v7, %v179_v43  ;;  %v612_v50 = vunpack.c.l.bf16 %v689_v40 }
  0x30   :  { %v251_v49 = vadd.f32 %v745_v7, %v180_v44  ;;  %v613_v51 = vunpack.c.h.bf16 %v689_v40  ;;  %v440_v52 = vsel %vm312_vm12, %v248_v38, %v376_v46  ;;  %v616_v54 = vunpack.c.l.bf16 %v690_v45  ;;  %v695_v38 = vld [vmem:[%s1151_s0 + $0xb0] sm:$0xff]  }
  0x31   :  { %v441_v53 = vsel %vm313_vm13, %v249_v39, %v377_v47  ;;  %v617_v55 = vunpack.c.h.bf16 %v690_v45  ;;  %504 = vst [vmem:[%s1154_s3 + $0xe0] sm:$0xff] %v440_v52  ;;  %vm314_vm14 = vcmp.gt.f32.partialorder %v250_v48, 0.0  ;;  %v378_v57 = vmul.f32 0.1, %v250_v48  ;;  %v696_v45 = vld [vmem:[%s1151_s0 + $0xb8] sm:$0xff]  }
  0x32   :  { %505 = vst [vmem:[%s1154_s3 + $0xe8] sm:$0xff] %v441_v53  ;;  %vm315_vm15 = vcmp.gt.f32.partialorder %v251_v49, 0.0  ;;  %v379_v58 = vmul.f32 0.1, %v251_v49  ;;  %v181_v59 = vmul.f32 %v612_v50, %v731_v1  ;;  %v182_v60 = vmul.f32 %v613_v51, %v731_v1 }
  0x33   :  { %v183_v61 = vmul.f32 %v616_v54, %v731_v1  ;;  %v184_v62 = vmul.f32 %v617_v55, %v731_v1  ;;  %v442_v0 = vsel %vm314_vm14, %v250_v48, %v378_v57  ;;  %v620_v3 = vunpack.c.l.bf16 %v691_v56 }
  0x34   :  { %v443_v2 = vsel %vm315_vm15, %v251_v49, %v379_v58  ;;  %v621_v4 = vunpack.c.h.bf16 %v691_v56  ;;  %506 = vst [vmem:[%s1154_s3 + $0xf0] sm:$0xff] %v442_v0  ;;  %v252_v5 = vadd.f32 %v745_v7, %v181_v59  ;;  %v253_v6 = vadd.f32 %v745_v7, %v182_v60 }
  0x35   :  { %507 = vst [vmem:[%s1154_s3 + $0xf8] sm:$0xff] %v443_v2  ;;  %v254_v8 = vadd.f32 %v745_v7, %v183_v61  ;;  %v255_v9 = vadd.f32 %v745_v7, %v184_v62  ;;  %v185_v10 = vmul.f32 %v620_v3, %v731_v1  ;;  %v624_v12 = vunpack.c.l.bf16 %v692_v63  ;;  %v697_v3 = vld [vmem:[%s1151_s0 + $0xc0] sm:$0xff]  }
  0x36   :  { %v186_v11 = vmul.f32 %v621_v4, %v731_v1  ;;  %v625_v13 = vunpack.c.h.bf16 %v692_v63  ;;  %vm316_vm0 = vcmp.gt.f32.partialorder %v252_v5, 0.0  ;;  %v380_v14 = vmul.f32 0.1, %v252_v5 }
  0x37   :  { %vm317_vm1 = vcmp.gt.f32.partialorder %v253_v6, 0.0  ;;  %v381_v15 = vmul.f32 0.1, %v253_v6  ;;  %vm318_vm2 = vcmp.gt.f32.partialorder %v254_v8, 0.0  ;;  %v382_v16 = vmul.f32 0.1, %v254_v8 }
  0x38   :  { %vm319_vm3 = vcmp.gt.f32.partialorder %v255_v9, 0.0  ;;  %v383_v17 = vmul.f32 0.1, %v255_v9  ;;  %v444_v18 = vsel %vm316_vm0, %v252_v5, %v380_v14  ;;  %v256_v20 = vadd.f32 %v745_v7, %v185_v10 }
  0x39   :  { %v445_v19 = vsel %vm317_vm1, %v253_v6, %v381_v15  ;;  %v257_v21 = vadd.f32 %v745_v7, %v186_v11  ;;  %508 = vst [vmem:[%s1154_s3 + $0x100] sm:$0xff] %v444_v18  ;;  %v446_v23 = vsel %vm318_vm2, %v254_v8, %v382_v16  ;;  %v187_v25 = vmul.f32 %v624_v12, %v731_v1 }
  0x3a   :  { %509 = vst [vmem:[%s1154_s3 + $0x108] sm:$0xff] %v445_v19  ;;  %v447_v24 = vsel %vm319_vm3, %v255_v9, %v383_v17  ;;  %v188_v26 = vmul.f32 %v625_v13, %v731_v1  ;;  %510 = vst [vmem:[%s1154_s3 + $0x110] sm:$0xff] %v446_v23  ;;  %vm320_vm4 = vcmp.gt.f32.partialorder %v256_v20, 0.0  ;;  %v384_v28 = vmul.f32 0.1, %v256_v20  ;;  %v698_v9 = vld [vmem:[%s1151_s0 + $0xc8] sm:$0xff]  }
  0x3b   :  { %511 = vst [vmem:[%s1154_s3 + $0x118] sm:$0xff] %v447_v24  ;;  %vm321_vm5 = vcmp.gt.f32.partialorder %v257_v21, 0.0  ;;  %v385_v29 = vmul.f32 0.1, %v257_v21  ;;  %v258_v30 = vadd.f32 %v745_v7, %v187_v25  ;;  %v628_v32 = vunpack.c.l.bf16 %v693_v22 }
  0x3c   :  { %v259_v31 = vadd.f32 %v745_v7, %v188_v26  ;;  %v629_v33 = vunpack.c.h.bf16 %v693_v22  ;;  %v448_v34 = vsel %vm320_vm4, %v256_v20, %v384_v28  ;;  %v632_v36 = vunpack.c.l.bf16 %v694_v27  ;;  %v699_v20 = vld [vmem:[%s1151_s0 + $0xd0] sm:$0xff]  }
  0x3d   :  { %v449_v35 = vsel %vm321_vm5, %v257_v21, %v385_v29  ;;  %v633_v37 = vunpack.c.h.bf16 %v694_v27  ;;  %512 = vst [vmem:[%s1154_s3 + $0x120] sm:$0xff] %v448_v34  ;;  %vm322_vm6 = vcmp.gt.f32.partialorder %v258_v30, 0.0  ;;  %v386_v39 = vmul.f32 0.1, %v258_v30  ;;  %v700_v27 = vld [vmem:[%s1151_s0 + $0xd8] sm:$0xff]  }
  0x3e   :  { %513 = vst [vmem:[%s1154_s3 + $0x128] sm:$0xff] %v449_v35  ;;  %vm323_vm7 = vcmp.gt.f32.partialorder %v259_v31, 0.0  ;;  %v387_v40 = vmul.f32 0.1, %v259_v31  ;;  %v189_v41 = vmul.f32 %v628_v32, %v731_v1  ;;  %v190_v42 = vmul.f32 %v629_v33, %v731_v1 }
  0x3f   :  { %v191_v43 = vmul.f32 %v632_v36, %v731_v1  ;;  %v192_v44 = vmul.f32 %v633_v37, %v731_v1  ;;  %v450_v46 = vsel %vm322_vm6, %v258_v30, %v386_v39  ;;  %v636_v48 = vunpack.c.l.bf16 %v695_v38 }
  0x40   :  { %v451_v47 = vsel %vm323_vm7, %v259_v31, %v387_v40  ;;  %v637_v49 = vunpack.c.h.bf16 %v695_v38  ;;  %514 = vst [vmem:[%s1154_s3 + $0x130] sm:$0xff] %v450_v46  ;;  %v260_v50 = vadd.f32 %v745_v7, %v189_v41  ;;  %v261_v51 = vadd.f32 %v745_v7, %v190_v42 }
  0x41   :  { %515 = vst [vmem:[%s1154_s3 + $0x138] sm:$0xff] %v451_v47  ;;  %v262_v52 = vadd.f32 %v745_v7, %v191_v43  ;;  %v263_v53 = vadd.f32 %v745_v7, %v192_v44  ;;  %v193_v54 = vmul.f32 %v636_v48, %v731_v1  ;;  %v640_v56 = vunpack.c.l.bf16 %v696_v45  ;;  %v701_v48 = vld [vmem:[%s1151_s0 + $0xe0] sm:$0xff]  }
  0x42   :  { %v194_v55 = vmul.f32 %v637_v49, %v731_v1  ;;  %v641_v57 = vunpack.c.h.bf16 %v696_v45  ;;  %vm324_vm8 = vcmp.gt.f32.partialorder %v260_v50, 0.0  ;;  %v388_v58 = vmul.f32 0.1, %v260_v50 }
  0x43   :  { %vm325_vm9 = vcmp.gt.f32.partialorder %v261_v51, 0.0  ;;  %v389_v59 = vmul.f32 0.1, %v261_v51  ;;  %vm326_vm10 = vcmp.gt.f32.partialorder %v262_v52, 0.0  ;;  %v390_v60 = vmul.f32 0.1, %v262_v52 }
  0x44   :  { %vm327_vm11 = vcmp.gt.f32.partialorder %v263_v53, 0.0  ;;  %v391_v61 = vmul.f32 0.1, %v263_v53  ;;  %v452_v62 = vsel %vm324_vm8, %v260_v50, %v388_v58  ;;  %v264_v0 = vadd.f32 %v745_v7, %v193_v54 }
  0x45   :  { %v453_v63 = vsel %vm325_vm9, %v261_v51, %v389_v59  ;;  %v265_v2 = vadd.f32 %v745_v7, %v194_v55  ;;  %516 = vst [vmem:[%s1154_s3 + $0x140] sm:$0xff] %v452_v62  ;;  %v454_v4 = vsel %vm326_vm10, %v262_v52, %v390_v60  ;;  %v195_v6 = vmul.f32 %v640_v56, %v731_v1 }
  0x46   :  { %517 = vst [vmem:[%s1154_s3 + $0x148] sm:$0xff] %v453_v63  ;;  %v455_v5 = vsel %vm327_vm11, %v263_v53, %v391_v61  ;;  %v196_v8 = vmul.f32 %v641_v57, %v731_v1  ;;  %518 = vst [vmem:[%s1154_s3 + $0x150] sm:$0xff] %v454_v4  ;;  %vm328_vm12 = vcmp.gt.f32.partialorder %v264_v0, 0.0  ;;  %v392_v10 = vmul.f32 0.1, %v264_v0  ;;  %v702_v53 = vld [vmem:[%s1151_s0 + $0xe8] sm:$0xff]  }
  0x47   :  { %519 = vst [vmem:[%s1154_s3 + $0x158] sm:$0xff] %v455_v5  ;;  %vm329_vm13 = vcmp.gt.f32.partialorder %v265_v2, 0.0  ;;  %v393_v11 = vmul.f32 0.1, %v265_v2  ;;  %v266_v12 = vadd.f32 %v745_v7, %v195_v6  ;;  %v644_v14 = vunpack.c.l.bf16 %v697_v3 }
  0x48   :  { %v267_v13 = vadd.f32 %v745_v7, %v196_v8  ;;  %v645_v15 = vunpack.c.h.bf16 %v697_v3  ;;  %v456_v16 = vsel %vm328_vm12, %v264_v0, %v392_v10  ;;  %v648_v18 = vunpack.c.l.bf16 %v698_v9  ;;  %v703_v0 = vld [vmem:[%s1151_s0 + $0xf0] sm:$0xff]  }
  0x49   :  { %v457_v17 = vsel %vm329_vm13, %v265_v2, %v393_v11  ;;  %v649_v19 = vunpack.c.h.bf16 %v698_v9  ;;  %520 = vst [vmem:[%s1154_s3 + $0x160] sm:$0xff] %v456_v16  ;;  %vm330_vm14 = vcmp.gt.f32.partialorder %v266_v12, 0.0  ;;  %v394_v21 = vmul.f32 0.1, %v266_v12  ;;  %v704_v9 = vld [vmem:[%s1151_s0 + $0xf8] sm:$0xff]  }
  0x4a   :  { %521 = vst [vmem:[%s1154_s3 + $0x168] sm:$0xff] %v457_v17  ;;  %vm331_vm15 = vcmp.gt.f32.partialorder %v267_v13, 0.0  ;;  %v395_v22 = vmul.f32 0.1, %v267_v13  ;;  %v197_v23 = vmul.f32 %v644_v14, %v731_v1  ;;  %v198_v24 = vmul.f32 %v645_v15, %v731_v1 }
  0x4b   :  { %v199_v25 = vmul.f32 %v648_v18, %v731_v1  ;;  %v200_v26 = vmul.f32 %v649_v19, %v731_v1  ;;  %v458_v28 = vsel %vm330_vm14, %v266_v12, %v394_v21  ;;  %v652_v30 = vunpack.c.l.bf16 %v699_v20 }
  0x4c   :  { %v459_v29 = vsel %vm331_vm15, %v267_v13, %v395_v22  ;;  %v653_v31 = vunpack.c.h.bf16 %v699_v20  ;;  %522 = vst [vmem:[%s1154_s3 + $0x170] sm:$0xff] %v458_v28  ;;  %v268_v32 = vadd.f32 %v745_v7, %v197_v23  ;;  %v269_v33 = vadd.f32 %v745_v7, %v198_v24 }
  0x4d   :  { %523 = vst [vmem:[%s1154_s3 + $0x178] sm:$0xff] %v459_v29  ;;  %v270_v34 = vadd.f32 %v745_v7, %v199_v25  ;;  %v271_v35 = vadd.f32 %v745_v7, %v200_v26  ;;  %v201_v36 = vmul.f32 %v652_v30, %v731_v1  ;;  %v656_v38 = vunpack.c.l.bf16 %v700_v27 }
  0x4e   :  { %v202_v37 = vmul.f32 %v653_v31, %v731_v1  ;;  %v657_v39 = vunpack.c.h.bf16 %v700_v27  ;;  %vm332_vm0 = vcmp.gt.f32.partialorder %v268_v32, 0.0  ;;  %v396_v40 = vmul.f32 0.1, %v268_v32 }
  0x4f   :  { %vm333_vm1 = vcmp.gt.f32.partialorder %v269_v33, 0.0  ;;  %v397_v41 = vmul.f32 0.1, %v269_v33  ;;  %vm334_vm2 = vcmp.gt.f32.partialorder %v270_v34, 0.0  ;;  %v398_v42 = vmul.f32 0.1, %v270_v34 }
  0x50   :  { %vm335_vm3 = vcmp.gt.f32.partialorder %v271_v35, 0.0  ;;  %v399_v43 = vmul.f32 0.1, %v271_v35  ;;  %v460_v44 = vsel %vm332_vm0, %v268_v32, %v396_v40  ;;  %v272_v46 = vadd.f32 %v745_v7, %v201_v36 }
  0x51   :  { %v461_v45 = vsel %vm333_vm1, %v269_v33, %v397_v41  ;;  %v273_v47 = vadd.f32 %v745_v7, %v202_v37  ;;  %524 = vst [vmem:[%s1154_s3 + $0x180] sm:$0xff] %v460_v44  ;;  %v462_v49 = vsel %vm334_vm2, %v270_v34, %v398_v42  ;;  %v203_v51 = vmul.f32 %v656_v38, %v731_v1 }
  0x52   :  { %525 = vst [vmem:[%s1154_s3 + $0x188] sm:$0xff] %v461_v45  ;;  %v463_v50 = vsel %vm335_vm3, %v271_v35, %v399_v43  ;;  %v204_v52 = vmul.f32 %v657_v39, %v731_v1  ;;  %526 = vst [vmem:[%s1154_s3 + $0x190] sm:$0xff] %v462_v49  ;;  %vm336_vm4 = vcmp.gt.f32.partialorder %v272_v46, 0.0  ;;  %v400_v54 = vmul.f32 0.1, %v272_v46 }
  0x53   :  { %527 = vst [vmem:[%s1154_s3 + $0x198] sm:$0xff] %v463_v50  ;;  %vm337_vm5 = vcmp.gt.f32.partialorder %v273_v47, 0.0  ;;  %v401_v55 = vmul.f32 0.1, %v273_v47  ;;  %v274_v56 = vadd.f32 %v745_v7, %v203_v51  ;;  %v660_v58 = vunpack.c.l.bf16 %v701_v48 }
  0x54   :  { %v275_v57 = vadd.f32 %v745_v7, %v204_v52  ;;  %v661_v59 = vunpack.c.h.bf16 %v701_v48  ;;  %v464_v60 = vsel %vm336_vm4, %v272_v46, %v400_v54  ;;  %v664_v62 = vunpack.c.l.bf16 %v702_v53 }
  0x55   :  { %v465_v61 = vsel %vm337_vm5, %v273_v47, %v401_v55  ;;  %v665_v63 = vunpack.c.h.bf16 %v702_v53  ;;  %528 = vst [vmem:[%s1154_s3 + $0x1a0] sm:$0xff] %v464_v60  ;;  %vm338_vm6 = vcmp.gt.f32.partialorder %v274_v56, 0.0  ;;  %v402_v2 = vmul.f32 0.1, %v274_v56 }
  0x56   :  { %529 = vst [vmem:[%s1154_s3 + $0x1a8] sm:$0xff] %v465_v61  ;;  %vm339_vm7 = vcmp.gt.f32.partialorder %v275_v57, 0.0  ;;  %v403_v3 = vmul.f32 0.1, %v275_v57  ;;  %v205_v4 = vmul.f32 %v660_v58, %v731_v1  ;;  %v206_v5 = vmul.f32 %v661_v59, %v731_v1 }
  0x57   :  { %v207_v6 = vmul.f32 %v664_v62, %v731_v1  ;;  %v208_v8 = vmul.f32 %v665_v63, %v731_v1  ;;  %v466_v10 = vsel %vm338_vm6, %v274_v56, %v402_v2  ;;  %v668_v12 = vunpack.c.l.bf16 %v703_v0 }
  0x58   :  { %v467_v11 = vsel %vm339_vm7, %v275_v57, %v403_v3  ;;  %v669_v13 = vunpack.c.h.bf16 %v703_v0  ;;  %530 = vst [vmem:[%s1154_s3 + $0x1b0] sm:$0xff] %v466_v10  ;;  %v276_v14 = vadd.f32 %v745_v7, %v205_v4  ;;  %v277_v15 = vadd.f32 %v745_v7, %v206_v5 }
  0x59   :  { %531 = vst [vmem:[%s1154_s3 + $0x1b8] sm:$0xff] %v467_v11  ;;  %v278_v16 = vadd.f32 %v745_v7, %v207_v6  ;;  %v279_v17 = vadd.f32 %v745_v7, %v208_v8  ;;  %v209_v18 = vmul.f32 %v668_v12, %v731_v1  ;;  %v672_v20 = vunpack.c.l.bf16 %v704_v9 }
  0x5a   :  { %v210_v19 = vmul.f32 %v669_v13, %v731_v1  ;;  %v673_v21 = vunpack.c.h.bf16 %v704_v9  ;;  %vm340_vm8 = vcmp.gt.f32.partialorder %v276_v14, 0.0  ;;  %v404_v22 = vmul.f32 0.1, %v276_v14 }
  0x5b   :  { %vm341_vm9 = vcmp.gt.f32.partialorder %v277_v15, 0.0  ;;  %v405_v23 = vmul.f32 0.1, %v277_v15  ;;  %vm342_vm10 = vcmp.gt.f32.partialorder %v278_v16, 0.0  ;;  %v406_v24 = vmul.f32 0.1, %v278_v16 }
  0x5c   :  { %vm343_vm11 = vcmp.gt.f32.partialorder %v279_v17, 0.0  ;;  %v407_v25 = vmul.f32 0.1, %v279_v17  ;;  %v468_v26 = vsel %vm340_vm8, %v276_v14, %v404_v22  ;;  %v280_v28 = vadd.f32 %v745_v7, %v209_v18 }
  0x5d   :  { %v469_v27 = vsel %vm341_vm9, %v277_v15, %v405_v23  ;;  %v281_v29 = vadd.f32 %v745_v7, %v210_v19  ;;  %532 = vst [vmem:[%s1154_s3 + $0x1c0] sm:$0xff] %v468_v26  ;;  %v470_v30 = vsel %vm342_vm10, %v278_v16, %v406_v24  ;;  %v211_v32 = vmul.f32 %v672_v20, %v731_v1 }
  0x5e   :  { %533 = vst [vmem:[%s1154_s3 + $0x1c8] sm:$0xff] %v469_v27  ;;  %v471_v31 = vsel %vm343_vm11, %v279_v17, %v407_v25  ;;  %v212_v33 = vmul.f32 %v673_v21, %v731_v1  ;;  %534 = vst [vmem:[%s1154_s3 + $0x1d0] sm:$0xff] %v470_v30  ;;  %vm344_vm12 = vcmp.gt.f32.partialorder %v280_v28, 0.0  ;;  %v408_v34 = vmul.f32 0.1, %v280_v28 }
  0x5f   :  { %535 = vst [vmem:[%s1154_s3 + $0x1d8] sm:$0xff] %v471_v31  ;;  %vm345_vm13 = vcmp.gt.f32.partialorder %v281_v29, 0.0  ;;  %v409_v35 = vmul.f32 0.1, %v281_v29  ;;  %v282_v36 = vadd.f32 %v745_v7, %v211_v32 }
  0x60   :  { %v283_v37 = vadd.f32 %v745_v7, %v212_v33  ;;  %v472_v38 = vsel %vm344_vm12, %v280_v28, %v408_v34 }
  0x61   :  { %v473_v39 = vsel %vm345_vm13, %v281_v29, %v409_v35  ;;  %536 = vst [vmem:[%s1154_s3 + $0x1e0] sm:$0xff] %v472_v38  ;;  %vm346_vm14 = vcmp.gt.f32.partialorder %v282_v36, 0.0  ;;  %v410_v1 = vmul.f32 0.1, %v282_v36 }
  0x62   :  { %537 = vst [vmem:[%s1154_s3 + $0x1e8] sm:$0xff] %v473_v39  ;;  %vm347_vm15 = vcmp.gt.f32.partialorder %v283_v37, 0.0  ;;  %v411_v40 = vmul.f32 0.1, %v283_v37 }
  0x63   :  { %v474_v41 = vsel %vm346_vm14, %v282_v36, %v410_v1 }
  0x64   :  { %v475_v42 = vsel %vm347_vm15, %v283_v37, %v411_v40  ;;  %538 = vst [vmem:[%s1154_s3 + $0x1f0] sm:$0xff] %v474_v41 }
  0x65   :  { %539 = vst [vmem:[%s1154_s3 + $0x1f8] sm:$0xff] %v475_v42 }

// kernel: conv_bn_leaky.2
= control target key start
LH: loop header
LB: loop body
LE: loop exit
PB: predicated region body
PF: predicated region fallthrough
CT: control target
= control target key end

     0   :  { %s1474_s12 = smov 0   ;;  %s1476_s13 = smov 0   ;;  %s1666_s0 = inlined_call_operand.vmem [shape: bf16[512,128], index: 0, kind: input, shape index: {}]   ;;  %s1667_s1 = inlined_call_operand.vmem [shape: bf16[128,128], index: 1, kind: input, shape index: {}]   ;;  %s1668_s2 = inlined_call_operand.vmem [shape: bf16[512,128], index: 2, kind: output, shape index: {0}]   ;;  %s1669_s3 = inlined_call_operand.vmem [shape: f32[16,128], index: 3, kind: output, shape index: {1}]  }
   0x1   :  { %s1478_s14 = smov 0  }
   0x2 LB: > { %s26_s15 = sadd.s32 1, %s1448_s13  ;;  %p1103_p0 = scmp.ge.s32.totalorder %s1452_s14, 1  ;;  %s1452_s14 = sphi %s1478_s14, %s14_s14   ;;  %s1448_s13 = sphi %s1476_s13, %s1671_s13   ;;  %s1444_s12 = sphi %s1474_s12, %s1670_s12  }
   0x3   : > { %p28_p1 = scmp.ge.s32.totalorder %s26_s15, 2  ;;  %p158_p2 = scmp.lt.s32.totalorder %s1452_s14, 3 }
   0x5   : > { %s1673_s15 = smov (%p28_p1, %s26_s15), 0  ;;  %p159_p3 = pnand %p1103_p0, %p158_p2 }
   0x6   : > { %v1406_v0 = vld [vmem:[%s1667_s1] sm:$0xff] (!%p159_p3)   ;;  %s1104_s18 = sshll.u32 (!%p159_p3), %s1444_s12, 5  ;;  %v1407_v1 = vld [vmem:[%s1667_s1 + $0x8] sm:$0xff] (!%p159_p3)   ;;  %v1408_v2 = vld [vmem:[%s1667_s1 + $0x10] sm:$0xff] (!%p159_p3)   ;;  %p204_p5 = scmp.lt.s32.totalorder (!%p159_p3), %s1444_s12, 1  ;;  %vm995_vm0 = vcmask (!%p159_p3), 1040384  }
   0x7   : > { %162 = sbr.rel (%p159_p3) target bundleno = 333 (0x14d), region = 28  ;;  %p190_p4 = scmp.lt.s32.totalorder (!%p159_p3), %s1104_s18, 63  ;;  %1318 = vmatprep.subr.bf16.mxu0 (!%p159_p3), %v1406_v0  ;;  %1366 = vmatprep.subr.bf16.mxu1 (!%p159_p3), %v1406_v0  ;;  %v1409_v3 = vld [vmem:[%s1667_s1 + $0x18] sm:$0xff] (!%p159_p3)   ;;  %v1410_v5 = vld [vmem:[%s1667_s1 + $0x20] sm:$0xff] (!%p159_p3)   ;;  %v1411_v6 = vld [vmem:[%s1667_s1 + $0x28] sm:$0xff] (!%p159_p3)   ;;  %vm997_vm1 = vcmask (!%p159_p3), 1041408  }
   0x8   : > { %1319 = vmatpush3.bf16.msra.mxu0 (!%p159_p3), %v1406_v0  ;;  %1374 = vmatpush3.bf16.msra.mxu1 (!%p159_p3), %v1406_v0  ;;  %v1412_v8 = vld [vmem:[%s1667_s1 + $0x30] sm:$0xff] (!%p159_p3)   ;;  %v1413_v9 = vld [vmem:[%s1667_s1 + $0x38] sm:$0xff] (!%p159_p3)  }
   0x9   : > { %1320 = vmatprep.subr.bf16.mxu0 (!%p159_p3), %v1407_v1  ;;  %1367 = vmatprep.subr.bf16.mxu1 (!%p159_p3), %v1407_v1 }
   0xc   : > { %1321 = vmatpush3.bf16.msra.mxu0 (!%p159_p3), %v1407_v1  ;;  %1375 = vmatpush3.bf16.msra.mxu1 (!%p159_p3), %v1407_v1 }
   0xd   : > { %1322 = vmatprep.subr.bf16.mxu0 (!%p159_p3), %v1408_v2  ;;  %1368 = vmatprep.subr.bf16.mxu1 (!%p159_p3), %v1408_v2 }
   0xe   : > { %s1675_s18 = smov (!%p190_p4, %s1104_s18), 63  ;;  %s1677_s12 = smov (!%p204_p5, %s1444_s12), 1 }
   0xf   : > { %s1105_s23 = sshll.u32 %s1675_s18, 2  ;;  %s1108_s17 = sshll.u32 %s1677_s12, 3 }
  0x10   : > { %s1512_s26 = scalar_lea.vmem %s1666_s0, %s1105_s23  ;;  %1323 = vmatpush3.bf16.msra.mxu0 %v1408_v2  ;;  %1376 = vmatpush3.bf16.msra.mxu1 %v1408_v2  ;;  %s1554_s16 = scalar_lea.vmem %s1668_s2, %s1105_s23 }
  0x11   : > { %v1414_v4 = vld [vmem:[%s1512_s26] sm:$0xff]   ;;  %1324 = vmatprep.subr.bf16.mxu0 %v1409_v3  ;;  %1369 = vmatprep.subr.bf16.mxu1 %v1409_v3  ;;  %v1415_v10 = vld [vmem:[%s1512_s26 + $0x8] sm:$0xff]   ;;  %v1416_v12 = vld [vmem:[%s1512_s26 + $0x10] sm:$0xff]   ;;  %s207_s20 = scalar_lea.vmem %s1669_s3, %s1108_s17 }
  0x12   : > { %1334 = vmatprep.mubr.bf16.mxu0 %v1414_v4  ;;  %v1422_v7 = vld [vmem:[%s1512_s26 + $0x40] sm:$0xff]   ;;  %v1423_v11 = vld [vmem:[%s1512_s26 + $0x48] sm:$0xff]   ;;  %v1424_v13 = vld [vmem:[%s1512_s26 + $0x50] sm:$0xff]  }
  0x13   : > { %1350 = vmatprep.mubr.bf16.mxu1 %v1422_v7  ;;  %v1417_v14 = vld [vmem:[%s1512_s26 + $0x18] sm:$0xff]   ;;  %v1418_v16 = vld [vmem:[%s1512_s26 + $0x20] sm:$0xff]   ;;  %v1419_v18 = vld [vmem:[%s1512_s26 + $0x28] sm:$0xff]  }
  0x14   : > { %1325 = vmatpush3.bf16.msra.mxu0 %v1409_v3  ;;  %1377 = vmatpush3.bf16.msra.mxu1 %v1409_v3  ;;  %v1425_v15 = vld [vmem:[%s1512_s26 + $0x58] sm:$0xff]   ;;  %v1426_v17 = vld [vmem:[%s1512_s26 + $0x60] sm:$0xff]   ;;  %v1427_v19 = vld [vmem:[%s1512_s26 + $0x68] sm:$0xff]  }
  0x15   : > { %1326 = vmatprep.subr.bf16.mxu0 %v1410_v5  ;;  %1370 = vmatprep.subr.bf16.mxu1 %v1410_v5  ;;  %v1420_v20 = vld [vmem:[%s1512_s26 + $0x30] sm:$0xff]   ;;  %v1421_v22 = vld [vmem:[%s1512_s26 + $0x38] sm:$0xff]  }
  0x16   : > { %v1428_v21 = vld [vmem:[%s1512_s26 + $0x70] sm:$0xff]   ;;  %v1429_v23 = vld [vmem:[%s1512_s26 + $0x78] sm:$0xff]  }
  0x18   : > { %1327 = vmatpush3.bf16.msra.mxu0 %v1410_v5  ;;  %1378 = vmatpush3.bf16.msra.mxu1 %v1410_v5 }
  0x19   : > { %1328 = vmatprep.subr.bf16.mxu0 %v1411_v6  ;;  %1371 = vmatprep.subr.bf16.mxu1 %v1411_v6 }
  0x1c   : > { %1329 = vmatpush3.bf16.msra.mxu0 %v1411_v6  ;;  %1379 = vmatpush3.bf16.msra.mxu1 %v1411_v6 }
  0x1d   : > { %1330 = vmatprep.subr.bf16.mxu0 %v1412_v8  ;;  %1372 = vmatprep.subr.bf16.mxu1 %v1412_v8 }
  0x20   : > { %1331 = vmatpush3.bf16.msra.mxu0 %v1412_v8  ;;  %1380 = vmatpush3.bf16.msra.mxu1 %v1412_v8 }
  0x21   : > { %1332 = vmatprep.subr.bf16.mxu0 %v1413_v9  ;;  %1373 = vmatprep.subr.bf16.mxu1 %v1413_v9 }
  0x24   : > { %1333 = vmatpush3.bf16.msra.mxu0 %v1413_v9  ;;  %1381 = vmatpush3.bf16.msra.mxu1 %v1413_v9 }
  0x27   : > { %1335 = vmatmul.mubr.bf16.vlgmr.msra.gmra.mrb[0].mxu0 %v1415_v10  ;;  %1351 = vmatmul.mubr.bf16.vlgmr.msra.gmra.mrb[0].mxu1 %v1423_v11 }
  0x28   : > { %1338 = vmatprep.mubr.bf16.mxu0 %v1416_v12  ;;  %1354 = vmatprep.mubr.bf16.mxu1 %v1424_v13 }
  0x2f   : > { %1339 = vmatmul.mubr.bf16.gmra.mrb[4].mxu0 %v1417_v14  ;;  %1355 = vmatmul.mubr.bf16.gmra.mrb[4].mxu1 %v1425_v15 }
  0x30   : > { %1342 = vmatprep.mubr.bf16.mxu0 %v1418_v16  ;;  %1358 = vmatprep.mubr.bf16.mxu1 %v1426_v17 }
  0x37   : > { %1343 = vmatmul.mubr.bf16.gmra.mrb[8].mxu0 %v1419_v18  ;;  %1359 = vmatmul.mubr.bf16.gmra.mrb[8].mxu1 %v1427_v19 }
  0x38   : > { %1346 = vmatprep.mubr.bf16.mxu0 %v1420_v20  ;;  %1362 = vmatprep.mubr.bf16.mxu1 %v1428_v21 }
  0x3f   : > { %1347 = vmatmul.mubr.bf16.gmra.mrb[12].mxu0 %v1421_v22  ;;  %1363 = vmatmul.mubr.bf16.gmra.mrb[12].mxu1 %v1429_v23 }
  0xfa   : > { %v1336_v24 = vpop.f32.mrb[0].mxu0  ;;  %v1545_v25 = vpop.f32.mrb[0].mxu1 }
  0xfb   : > { %v503_v26 = vpop.f32.mrb[1].mxu0  ;;  %v1547_v27 = vpop.f32.mrb[1].mxu1  ;;  %v928_v39 = vmul.f32 %v1336_v24, %v1336_v24 }
  0xfc   : > { %v1337_v28 = vpop.f32.mrb[2].mxu0  ;;  %v1556_v29 = vpop.f32.mrb[2].mxu1  ;;  %v926_v30 = vmul.f32 %v503_v26, %v503_v26 }
  0xfd   : > { %v1207_v31 = vpack.c.bf16 %v1337_v28, %v1336_v24  ;;  %v506_v32 = vpop.f32.mrb[3].mxu0  ;;  %v1247_v33 = vpack.c.bf16 %v1556_v29, %v1545_v25  ;;  %v1560_v34 = vpop.f32.mrb[3].mxu1  ;;  %v929_v42 = vmul.f32 %v1337_v28, %v1337_v28 }
  0xfe   : > { %v1202_v35 = vpack.c.bf16 %v506_v32, %v503_v26  ;;  %v889_v36 = vadd.f32 %v506_v32, %v503_v26  ;;  %v927_v37 = vmul.f32 %v506_v32, %v506_v32  ;;  %v1242_v38 = vpack.c.bf16 %v1560_v34, %v1547_v27 }
  0xff   : > { %1279 = vst [vmem:[%s1554_s16 + $0x8] sm:$0xff] %v1207_v31   ;;  %1287 = vst [vmem:[%s1554_s16 + $0x48] sm:$0xff] %v1247_v33  }
 0x100   : > { %1203 = vst [vmem:[%s1554_s16] sm:$0xff] %v1202_v35   ;;  %v890_v40 = vadd.f32 %v1336_v24, %v889_v36  ;;  %v958_v41 = vadd.f32 %v927_v37, %v926_v30  ;;  %1286 = vst [vmem:[%s1554_s16 + $0x40] sm:$0xff] %v1242_v38  }
 0x102   : > { %v959_v43 = vadd.f32 %v958_v41, %v928_v39  ;;  %v1340_v44 = vpop.f32.mrb[4].mxu0  ;;  %v891_v45 = vadd.f32 %v1337_v28, %v890_v40  ;;  %v1568_v46 = vpop.f32.mrb[4].mxu1 }
 0x103   : > { %v519_v47 = vpop.f32.mrb[5].mxu0  ;;  %v1570_v48 = vpop.f32.mrb[5].mxu1  ;;  %v932_v63 = vmul.f32 %v1340_v44, %v1340_v44 }
 0x104   : > { %v892_v49 = vadd.f32 %v891_v45, %v519_v47  ;;  %v930_v50 = vmul.f32 %v519_v47, %v519_v47  ;;  %v960_v51 = vadd.f32 %v959_v43, %v929_v42  ;;  %v1341_v52 = vpop.f32.mrb[6].mxu0  ;;  %v1572_v53 = vpop.f32.mrb[6].mxu1 }
 0x105   : > { %v1217_v54 = vpack.c.bf16 %v1341_v52, %v1340_v44  ;;  %v522_v55 = vpop.f32.mrb[7].mxu0  ;;  %v1257_v56 = vpack.c.bf16 %v1572_v53, %v1568_v46  ;;  %v1576_v57 = vpop.f32.mrb[7].mxu1  ;;  %v933_v2 = vmul.f32 %v1341_v52, %v1341_v52 }
 0x106   : > { %v961_v58 = vadd.f32 %v960_v51, %v930_v50  ;;  %v1212_v59 = vpack.c.bf16 %v522_v55, %v519_v47  ;;  %v893_v60 = vadd.f32 %v892_v49, %v522_v55  ;;  %v931_v61 = vmul.f32 %v522_v55, %v522_v55 }
 0x107   : > { %1281 = vst [vmem:[%s1554_s16 + $0x18] sm:$0xff] %v1217_v54   ;;  %1289 = vst [vmem:[%s1554_s16 + $0x58] sm:$0xff] %v1257_v56   ;;  %v1252_v62 = vpack.c.bf16 %v1576_v57, %v1570_v48 }
 0x108   : > { %1280 = vst [vmem:[%s1554_s16 + $0x10] sm:$0xff] %v1212_v59   ;;  %v894_v0 = vadd.f32 %v1340_v44, %v893_v60  ;;  %v962_v1 = vadd.f32 %v961_v58, %v931_v61  ;;  %v942_v61 = vmul.f32 %v1547_v27, %v1547_v27 }
 0x109   : > { %1288 = vst [vmem:[%s1554_s16 + $0x50] sm:$0xff] %v1252_v62  }
 0x10a   : > { %v963_v3 = vadd.f32 %v962_v1, %v932_v63  ;;  %v1344_v4 = vpop.f32.mrb[8].mxu0  ;;  %v895_v5 = vadd.f32 %v1341_v52, %v894_v0  ;;  %v1584_v6 = vpop.f32.mrb[8].mxu1 }
 0x10b   : > { %v535_v7 = vpop.f32.mrb[9].mxu0  ;;  %v1586_v8 = vpop.f32.mrb[9].mxu1  ;;  %v936_v23 = vmul.f32 %v1344_v4, %v1344_v4 }
 0x10c   : > { %v896_v9 = vadd.f32 %v895_v5, %v535_v7  ;;  %v934_v10 = vmul.f32 %v535_v7, %v535_v7  ;;  %v964_v11 = vadd.f32 %v963_v3, %v933_v2  ;;  %v1345_v12 = vpop.f32.mrb[10].mxu0  ;;  %v1588_v13 = vpop.f32.mrb[10].mxu1  ;;  %v943_v2 = vmul.f32 %v1560_v34, %v1560_v34 }
 0x10d   : > { %v1227_v14 = vpack.c.bf16 %v1345_v12, %v1344_v4  ;;  %v538_v15 = vpop.f32.mrb[11].mxu0  ;;  %v1267_v16 = vpack.c.bf16 %v1588_v13, %v1584_v6  ;;  %v1592_v17 = vpop.f32.mrb[11].mxu1  ;;  %v937_v28 = vmul.f32 %v1345_v12, %v1345_v12  ;;  %v944_v3 = vmul.f32 %v1545_v25, %v1545_v25 }
 0x10e   : > { %v965_v18 = vadd.f32 %v964_v11, %v934_v10  ;;  %v1222_v19 = vpack.c.bf16 %v538_v15, %v535_v7  ;;  %v897_v20 = vadd.f32 %v896_v9, %v538_v15  ;;  %v935_v21 = vmul.f32 %v538_v15, %v538_v15 }
 0x10f   : > { %1283 = vst [vmem:[%s1554_s16 + $0x28] sm:$0xff] %v1227_v14   ;;  %1291 = vst [vmem:[%s1554_s16 + $0x68] sm:$0xff] %v1267_v16   ;;  %v1262_v22 = vpack.c.bf16 %v1592_v17, %v1586_v8  ;;  %v945_v7 = vmul.f32 %v1556_v29, %v1556_v29  ;;  %v947_v15 = vmul.f32 %v1576_v57, %v1576_v57 }
 0x110   : > { %1282 = vst [vmem:[%s1554_s16 + $0x20] sm:$0xff] %v1222_v19   ;;  %v898_v24 = vadd.f32 %v1344_v4, %v897_v20  ;;  %v966_v26 = vadd.f32 %v965_v18, %v935_v21 }
 0x111   : > { %1290 = vst [vmem:[%s1554_s16 + $0x60] sm:$0xff] %v1262_v22  }
 0x112   : > { %v967_v30 = vadd.f32 %v966_v26, %v936_v23  ;;  %v1348_v31 = vpop.f32.mrb[12].mxu0  ;;  %v899_v32 = vadd.f32 %v1345_v12, %v898_v24  ;;  %v1600_v33 = vpop.f32.mrb[12].mxu1  ;;  %v951_v24 = vmul.f32 %v1592_v17, %v1592_v17 }
 0x113   : > { %v551_v35 = vpop.f32.mrb[13].mxu0  ;;  %v615_v36 = vpop.f32.mrb[13].mxu1  ;;  %v940_v54 = vmul.f32 %v1348_v31, %v1348_v31 }
 0x114   : > { %v900_v37 = vadd.f32 %v899_v32, %v551_v35  ;;  %v938_v38 = vmul.f32 %v551_v35, %v551_v35  ;;  %v968_v39 = vadd.f32 %v967_v30, %v937_v28  ;;  %v1349_v40 = vpop.f32.mrb[14].mxu0  ;;  %v1602_v41 = vpop.f32.mrb[14].mxu1 }
 0x115   : > { %v1237_v42 = vpack.c.bf16 %v1349_v40, %v1348_v31  ;;  %v554_v43 = vpop.f32.mrb[15].mxu0  ;;  %v1277_v44 = vpack.c.bf16 %v1602_v41, %v1600_v33  ;;  %v618_v45 = vpop.f32.mrb[15].mxu1  ;;  %v941_v58 = vmul.f32 %v1349_v40, %v1349_v40 }
 0x116   : > { %v969_v47 = vadd.f32 %v968_v39, %v938_v38  ;;  %v1232_v49 = vpack.c.bf16 %v554_v43, %v551_v35  ;;  %v901_v50 = vadd.f32 %v900_v37, %v554_v43  ;;  %v939_v51 = vmul.f32 %v554_v43, %v554_v43 }
 0x117   : > { %1285 = vst [vmem:[%s1554_s16 + $0x38] sm:$0xff] %v1237_v42   ;;  %1293 = vst [vmem:[%s1554_s16 + $0x78] sm:$0xff] %v1277_v44   ;;  %v1272_v52 = vpack.c.bf16 %v618_v45, %v615_v36  ;;  %v956_v39 = vmul.f32 %v1600_v33, %v1600_v33  ;;  %v957_v42 = vmul.f32 %v1602_v41, %v1602_v41 }
 0x118   : > { %1284 = vst [vmem:[%s1554_s16 + $0x30] sm:$0xff] %v1232_v49   ;;  %v902_v55 = vadd.f32 %v1348_v31, %v901_v50  ;;  %v970_v56 = vadd.f32 %v969_v47, %v939_v51  ;;  %v954_v31 = vmul.f32 %v615_v36, %v615_v36 }
 0x119   : > { %1292 = vst [vmem:[%s1554_s16 + $0x70] sm:$0xff] %v1272_v52  }
 0x11a   : > { %v971_v59 = vadd.f32 %v970_v56, %v940_v54  ;;  %v903_v60 = vadd.f32 %v1349_v40, %v902_v55 }
 0x11c   : > { %v904_v62 = vadd.f32 %v903_v60, %v1547_v27  ;;  %v972_v63 = vadd.f32 %v971_v59, %v941_v58  ;;  %v946_v27 = vmul.f32 %v1570_v48, %v1570_v48 }
 0x11e   : > { %v973_v0 = vadd.f32 %v972_v63, %v942_v61  ;;  %v905_v1 = vadd.f32 %v904_v62, %v1560_v34 }
 0x120   : > { %v906_v4 = vadd.f32 %v1545_v25, %v905_v1  ;;  %v974_v5 = vadd.f32 %v973_v0, %v943_v2  ;;  %v948_v25 = vmul.f32 %v1568_v46, %v1568_v46 }
 0x122   : > { %v975_v9 = vadd.f32 %v974_v5, %v944_v3  ;;  %v907_v10 = vadd.f32 %v1556_v29, %v906_v4  ;;  %v949_v29 = vmul.f32 %v1572_v53, %v1572_v53 }
 0x124   : > { %v908_v11 = vadd.f32 %v907_v10, %v1570_v48  ;;  %v976_v12 = vadd.f32 %v975_v9, %v945_v7  ;;  %v950_v48 = vmul.f32 %v1586_v8, %v1586_v8 }
 0x126   : > { %v977_v14 = vadd.f32 %v976_v12, %v946_v27  ;;  %v909_v34 = vadd.f32 %v908_v11, %v1576_v57 }
 0x128   : > { %v910_v16 = vadd.f32 %v1568_v46, %v909_v34  ;;  %v978_v18 = vadd.f32 %v977_v14, %v947_v15  ;;  %v952_v46 = vmul.f32 %v1584_v6, %v1584_v6 }
 0x12a   : > { %v979_v19 = vadd.f32 %v978_v18, %v948_v25  ;;  %v911_v20 = vadd.f32 %v1572_v53, %v910_v16  ;;  %v953_v53 = vmul.f32 %v1588_v13, %v1588_v13 }
 0x12c   : > { %v912_v21 = vadd.f32 %v911_v20, %v1586_v8  ;;  %v980_v22 = vadd.f32 %v979_v19, %v949_v29 }
 0x12e   : > { %v981_v23 = vadd.f32 %v980_v22, %v950_v48  ;;  %v913_v57 = vadd.f32 %v912_v21, %v1592_v17  ;;  %v955_v17 = vmul.f32 %v618_v45, %v618_v45 }
 0x130   : > { %v914_v26 = vadd.f32 %v1584_v6, %v913_v57  ;;  %v982_v28 = vadd.f32 %v981_v23, %v951_v24 }
 0x132   : > { %v983_v30 = vadd.f32 %v982_v28, %v952_v46  ;;  %v915_v8 = vadd.f32 %v1588_v13, %v914_v26 }
 0x134   : > { %v916_v32 = vadd.f32 %v915_v8, %v615_v36  ;;  %v984_v35 = vadd.f32 %v983_v30, %v953_v53 }
 0x136   : > { %v985_v37 = vadd.f32 %v984_v35, %v954_v31  ;;  %v917_v38 = vadd.f32 %v916_v32, %v618_v45 }
 0x138   : > { %v918_v6 = vadd.f32 %v1600_v33, %v917_v38  ;;  %v986_v40 = vadd.f32 %v985_v37, %v955_v17 }
 0x13a   : > { %v919_v43 = vadd.f32 %v1602_v41, %v918_v6  ;;  %v987_v44 = vadd.f32 %v986_v40, %v956_v39 }
 0x13c   : > { %v920_v13 = vrot.slane %v919_v43, 4  ;;  %v988_v47 = vadd.f32 %v987_v44, %v957_v42 }
 0x13e   : > { %v921_v36 = vadd.f32 %v920_v13, %v919_v43  ;;  %v989_v49 = vrot.slane %v988_v47, 4 }
 0x140   : > { %v922_v50 = vrot.slane %v921_v36, 2  ;;  %v990_v51 = vadd.f32 %v989_v49, %v988_v47 }
 0x142   : > { %v923_v45 = vadd.f32 %v922_v50, %v921_v36  ;;  %v991_v52 = vrot.slane %v990_v51, 2 }
 0x144   : > { %v924_v54 = vrot.slane %v923_v45, 1  ;;  %v992_v55 = vadd.f32 %v991_v52, %v990_v51 }
 0x146   : > { %v993_v33 = vrot.slane %v992_v55, 1  ;;  %v925_v56 = vadd.f32 %v924_v54, %v923_v45 }
 0x148   : > { %v994_v58 = vadd.f32 %v993_v33, %v992_v55 }
 0x14a   : > { %v996_v41 = vsel %vm995_vm0, %v925_v56, %v994_v58 }
 0x14b   : > { %v998_v59 = vsel %vm997_vm1, %v996_v41, 0.0 }
 0x14c   : > { %999 = vst [vmem:[%s207_s20] sm:$0xff] %v998_v59 }
 0x14d PF: > { %s14_s14 = sadd.s32 1, %s1452_s14   ;;  %s1670_s12 = smov %s1448_s13 }
 0x14e   : > { %p11_p6 = scmp.ge.s32.totalorder %s14_s14, 4   ;;  %s1671_s13 = smov %s1673_s15 }
 0x150   :  { %13 = sbr.rel (!%p11_p6) target bundleno = 2 (0x2), region = 78 }

</bundles_post_ra>
